<compile_context>
chip_gen: v7x
topology: tpu7x:2x2x1
jax: 0.10.0
libtpu: 0.0.40
codegen_flags: <defaults>
</compile_context>

<pallas_src>
import functools

import jax
import jax.numpy as jnp
from jax.experimental import pallas as pl
from jax.experimental.pallas import tpu as pltpu

STATE_DIM = 4
ACTION_DIM = 2
RL_HIDDEN = 32          # hidden width (stand-in for the module's RL_HIDDEN constant)
DEFAULT_BLOCK_B = 512   # batch-tile (lane) width; multiple of 128


def _qnet_kernel(xT_ref, w1_ref, b1_ref, w2_ref, b2_ref, w3_ref, b3_ref, o_ref):
    # xT_ref: (STATE_DIM, TB)  -- batch on the lane axis
    # wN_ref: PyTorch-layout (out, in); bN_ref: (out, 1) f32 column (lane-broadcast)
    xT = xT_ref[...]

    # TODO(synk): the K=4 first contraction could be 4 VPU broadcast-FMAs instead of an
    # MXU matmul; left on the MXU since at these sizes the kernel is overhead-bound.
    h1 = jnp.dot(w1_ref[...], xT, preferred_element_type=jnp.float32)      # (H, TB) f32
    h1 = jnp.maximum(h1 + b1_ref[...], 0.0)                                # f32 elementwise

    h2 = jnp.dot(w2_ref[...], h1.astype(w2_ref.dtype),
                 preferred_element_type=jnp.float32)                       # (H, TB) f32
    h2 = jnp.maximum(h2 + b2_ref[...], 0.0)

    q = jnp.dot(w3_ref[...], h2.astype(w3_ref.dtype),
                preferred_element_type=jnp.float32)                        # (A, TB) f32
    o_ref[...] = (q + b3_ref[...]).astype(o_ref.dtype)                     # lane-dense store


def prepare_params(params, compute_dtype=jnp.float32):
    """One-time layout fix: keep PyTorch (out,in) weights, biases -> (out,1) f32 columns.
    Pass compute_dtype=jnp.bfloat16 on v6e/v7x to halve DMA bytes / feed the bf16 MXU."""
    cd = compute_dtype
    f32 = jnp.float32
    return {
        "w1": jnp.asarray(params["w1"], cd), "b1": jnp.asarray(params["b1"], f32).reshape(-1, 1),
        "w2": jnp.asarray(params["w2"], cd), "b2": jnp.asarray(params["b2"], f32).reshape(-1, 1),
        "w3": jnp.asarray(params["w3"], cd), "b3": jnp.asarray(params["b3"], f32).reshape(-1, 1),
    }


@functools.partial(jax.jit, static_argnames=("block_b",))
def _qnet_forward(x, w1, b1, w2, b2, w3, b3, *, block_b):
    B = x.shape[0]
    action_dim = w3.shape[0]

    # Batch tile on the lane axis: multiple of 128, capped by the (rounded-up) batch.
    b128 = pl.cdiv(B, 128) * 128
    tb = min(block_b, b128)
    bp = pl.cdiv(B, tb) * tb
    num_tiles = bp // tb

    xT = x.astype(w1.dtype).T                          # (state_dim, B): batch on lanes
    xT = jnp.pad(xT, ((0, 0), (0, bp - B)))            # lane-pad to whole tiles

    # Weights/biases: constant block index -> stay VMEM-resident across grid steps.
    resident = lambda shape: pl.BlockSpec(shape, lambda i: (0, 0))

    q_t = pl.pallas_call(
        _qnet_kernel,
        out_shape=jax.ShapeDtypeStruct((action_dim, bp), jnp.float32),
        grid=(num_tiles,),
        in_specs=[
            pl.BlockSpec((x.shape[1], tb), lambda i: (0, i)),        # x^T batch tiles
            resident(w1.shape), resident(b1.shape),
            resident(w2.shape), resident(b2.shape),
            resident(w3.shape), resident(b3.shape),
        ],
        out_specs=pl.BlockSpec((action_dim, tb), lambda i: (0, i)),  # lane-dense output
        compiler_params=pltpu.CompilerParams(
            # v7x: shard batch tiles across both TensorCores; no-op on v5e/v6e.
            dimension_semantics=("parallel",),
            # Per-step VMEM: (4+2)*tb*4B of activations + <10 KiB of weights -- far
            # under the default scoped limit on v5e/v6e/v7x, so no vmem override needed.
        ),
    )(xT, w1, b1, w2, b2, w3, b3)

    return q_t[:, :B].T                                # back to PyTorch (B, action_dim)


def qnetwork_forward(x, prepped, *, block_b=DEFAULT_BLOCK_B):
    """x: (B, state_dim) float32; prepped: output of prepare_params()."""
    return _qnet_forward(x, prepped["w1"], prepped["b1"], prepped["w2"], prepped["b2"],
                         prepped["w3"], prepped["b3"], block_b=block_b)


def init_params(key, state_dim=STATE_DIM, action_dim=ACTION_DIM, hidden=RL_HIDDEN):
    """Deterministic synthetic init mimicking nn.Linear's U(-1/sqrt(fan_in), 1/sqrt(fan_in))."""
    ks = jax.random.split(key, 6)

    def lin(kw, kb, fan_in, fan_out):
        bound = 1.0 / jnp.sqrt(jnp.float32(fan_in))
        w = jax.random.uniform(kw, (fan_out, fan_in), jnp.float32, -bound, bound)
        b = jax.random.uniform(kb, (fan_out,), jnp.float32, -bound, bound)
        return w, b

    w1, b1 = lin(ks[0], ks[1], state_dim, hidden)
    w2, b2 = lin(ks[2], ks[3], hidden, hidden)
    w3, b3 = lin(ks[4], ks[5], hidden, action_dim)
    return {"w1": w1, "b1": b1, "w2": w2, "b2": b2, "w3": w3, "b3": b3}


def qnetwork_ref(x, p):
    """Pure-JAX reference replicating the PyTorch forward exactly."""
    h = jnp.maximum(x @ p["w1"].T + p["b1"], 0.0)
    h = jnp.maximum(h @ p["w2"].T + p["b2"], 0.0)
    return h @ p["w3"].T + p["b3"]


if __name__ == "__main__":
    key = jax.random.PRNGKey(0)
    k_params, k_x1, k_x2 = jax.random.split(key, 3)

    params = init_params(k_params)
    prep_f32 = prepare_params(params, jnp.float32)

    # Small batch (single 128-lane tile, lane-padded).
    x_small = jax.random.normal(k_x1, (8, STATE_DIM), jnp.float32)
    out_small = jax.block_until_ready(qnetwork_forward(x_small, prep_f32))
    ref_small = qnetwork_ref(x_small, params)
    assert out_small.shape == (8, ACTION_DIM), out_small.shape
    assert jnp.allclose(out_small, ref_small, atol=1e-5, rtol=1e-5), "f32 small-batch mismatch"

    # Larger batch exercising the batch grid (3 x 128-lane tiles, "parallel" axis).
    x_big = jax.random.normal(k_x2, (384, STATE_DIM), jnp.float32)
    out_big = jax.block_until_ready(qnetwork_forward(x_big, prep_f32, block_b=128))
    ref_big = qnetwork_ref(x_big, params)
    assert out_big.shape == (384, ACTION_DIM), out_big.shape
    assert jnp.allclose(out_big, ref_big, atol=1e-5, rtol=1e-5), "f32 multi-tile mismatch"

    # bf16 MXU-operand path (v6e/v7x lever): f32 accumulation + f32 bias/ReLU tail.
    prep_bf16 = prepare_params(params, jnp.bfloat16)
    out_bf16 = jax.block_until_ready(qnetwork_forward(x_big, prep_bf16))
    assert jnp.allclose(out_bf16, ref_big, atol=5e-2, rtol=5e-2), "bf16 path mismatch"

    print("KERNEL_OK")
</pallas_src>

<mosaic_0001>
module attributes {stable_mosaic.version = 11 : i64} {
  func.func @_qnet_kernel(%arg0: i32, %arg1: memref<4x128xf32, #tpu.memory_space<vmem>>, %arg2: memref<32x4xf32, #tpu.memory_space<vmem>>, %arg3: memref<32x1xf32, #tpu.memory_space<vmem>>, %arg4: memref<32x32xf32, #tpu.memory_space<vmem>>, %arg5: memref<32x1xf32, #tpu.memory_space<vmem>>, %arg6: memref<2x32xf32, #tpu.memory_space<vmem>>, %arg7: memref<2x1xf32, #tpu.memory_space<vmem>>, %arg8: memref<2x128xf32, #tpu.memory_space<vmem>>) attributes {dimension_semantics = [#tpu.dimension_semantics<parallel>], iteration_bounds = array<i64: 1>, scalar_prefetch = 0 : i64, scratch_operands = 0 : i64, tpu.core_type = #tpu.core_type<tc>, window_params = [{transform_indices = @transform_0, window_bounds = array<i64: 4, 128>}, {pipeline_mode = #tpu.pipeline_mode<synchronous>, transform_indices = @transform_1, window_bounds = array<i64: 32, 4>}, {pipeline_mode = #tpu.pipeline_mode<synchronous>, transform_indices = @transform_2, window_bounds = array<i64: 32, 1>}, {pipeline_mode = #tpu.pipeline_mode<synchronous>, transform_indices = @transform_3, window_bounds = array<i64: 32, 32>}, {pipeline_mode = #tpu.pipeline_mode<synchronous>, transform_indices = @transform_4, window_bounds = array<i64: 32, 1>}, {pipeline_mode = #tpu.pipeline_mode<synchronous>, transform_indices = @transform_5, window_bounds = array<i64: 2, 32>}, {pipeline_mode = #tpu.pipeline_mode<synchronous>, transform_indices = @transform_6, window_bounds = array<i64: 2, 1>}, {transform_indices = @transform_7, window_bounds = array<i64: 2, 128>}]} {
    %c0 = arith.constant 0 : index
    %c0_0 = arith.constant 0 : index
    %0 = vector.load %arg1[%c0, %c0_0] : memref<4x128xf32, #tpu.memory_space<vmem>>, vector<4x128xf32>
    %c0_1 = arith.constant 0 : index
    %c0_2 = arith.constant 0 : index
    %1 = vector.load %arg2[%c0_1, %c0_2] : memref<32x4xf32, #tpu.memory_space<vmem>>, vector<32x4xf32>
    %cst = arith.constant dense<0.000000e+00> : vector<32x128xf32>
    %2 = tpu.matmul %1, %0, %cst {dimension_numbers = #tpu.dot_dimension_numbers<[1], [0], [0], [1], [0, 0, 1, 1], [], []>} : vector<32x4xf32>, vector<4x128xf32>, vector<32x128xf32> -> vector<32x128xf32>
    %c0_3 = arith.constant 0 : index
    %c0_4 = arith.constant 0 : index
    %3 = vector.load %arg3[%c0_3, %c0_4] : memref<32x1xf32, #tpu.memory_space<vmem>>, vector<32x1xf32>
    %4 = vector.broadcast %3 : vector<32x1xf32> to vector<32x128xf32>
    %5 = arith.addf %2, %4 : vector<32x128xf32>
    %cst_5 = arith.constant 0.000000e+00 : f32
    %6 = vector.broadcast %cst_5 : f32 to vector<32x128xf32>
    %7 = arith.maximumf %5, %6 : vector<32x128xf32>
    %c0_6 = arith.constant 0 : index
    %c0_7 = arith.constant 0 : index
    %8 = vector.load %arg4[%c0_6, %c0_7] : memref<32x32xf32, #tpu.memory_space<vmem>>, vector<32x32xf32>
    %cst_8 = arith.constant dense<0.000000e+00> : vector<32x128xf32>
    %9 = tpu.matmul %8, %7, %cst_8 {dimension_numbers = #tpu.dot_dimension_numbers<[1], [0], [0], [1], [0, 0, 1, 1], [], []>} : vector<32x32xf32>, vector<32x128xf32>, vector<32x128xf32> -> vector<32x128xf32>
    %c0_9 = arith.constant 0 : index
    %c0_10 = arith.constant 0 : index
    %10 = vector.load %arg5[%c0_9, %c0_10] : memref<32x1xf32, #tpu.memory_space<vmem>>, vector<32x1xf32>
    %11 = vector.broadcast %10 : vector<32x1xf32> to vector<32x128xf32>
    %12 = arith.addf %9, %11 : vector<32x128xf32>
    %cst_11 = arith.constant 0.000000e+00 : f32
    %13 = vector.broadcast %cst_11 : f32 to vector<32x128xf32>
    %14 = arith.maximumf %12, %13 : vector<32x128xf32>
    %c0_12 = arith.constant 0 : index
    %c0_13 = arith.constant 0 : index
    %15 = vector.load %arg6[%c0_12, %c0_13] : memref<2x32xf32, #tpu.memory_space<vmem>>, vector<2x32xf32>
    %cst_14 = arith.constant dense<0.000000e+00> : vector<2x128xf32>
    %16 = tpu.matmul %15, %14, %cst_14 {dimension_numbers = #tpu.dot_dimension_numbers<[1], [0], [0], [1], [0, 0, 1, 1], [], []>} : vector<2x32xf32>, vector<32x128xf32>, vector<2x128xf32> -> vector<2x128xf32>
    %c0_15 = arith.constant 0 : index
    %c0_16 = arith.constant 0 : index
    %17 = vector.load %arg7[%c0_15, %c0_16] : memref<2x1xf32, #tpu.memory_space<vmem>>, vector<2x1xf32>
    %18 = vector.broadcast %17 : vector<2x1xf32> to vector<2x128xf32>
    %19 = arith.addf %16, %18 : vector<2x128xf32>
    %c0_17 = arith.constant 0 : index
    %c0_18 = arith.constant 0 : index
    %20 = vector.load %arg8[%c0_17, %c0_18] : memref<2x128xf32, #tpu.memory_space<vmem>>, vector<2x128xf32>
    tpu.vector_store %arg8[%c0_17, %c0_18], %19 {strides = array<i32>} : memref<2x128xf32, #tpu.memory_space<vmem>>, vector<2x128xf32>,
    return
  }
  func.func @transform_0(%arg0: i32) -> (i32, i32) {
    %c0_i32 = arith.constant 0 : i32
    %c0_i32_0 = arith.constant 0 : i32
    return %c0_i32, %arg0 : i32, i32
  }
  func.func @transform_1(%arg0: i32) -> (i32, i32) {
    %c0_i32 = arith.constant 0 : i32
    %c0_i32_0 = arith.constant 0 : i32
    %c0_i32_1 = arith.constant 0 : i32
    return %c0_i32, %c0_i32_0 : i32, i32
  }
  func.func @transform_2(%arg0: i32) -> (i32, i32) {
    %c0_i32 = arith.constant 0 : i32
    %c0_i32_0 = arith.constant 0 : i32
    %c0_i32_1 = arith.constant 0 : i32
    return %c0_i32, %c0_i32_0 : i32, i32
  }
  func.func @transform_3(%arg0: i32) -> (i32, i32) {
    %c0_i32 = arith.constant 0 : i32
    %c0_i32_0 = arith.constant 0 : i32
    %c0_i32_1 = arith.constant 0 : i32
    return %c0_i32, %c0_i32_0 : i32, i32
  }
  func.func @transform_4(%arg0: i32) -> (i32, i32) {
    %c0_i32 = arith.constant 0 : i32
    %c0_i32_0 = arith.constant 0 : i32
    %c0_i32_1 = arith.constant 0 : i32
    return %c0_i32, %c0_i32_0 : i32, i32
  }
  func.func @transform_5(%arg0: i32) -> (i32, i32) {
    %c0_i32 = arith.constant 0 : i32
    %c0_i32_0 = arith.constant 0 : i32
    %c0_i32_1 = arith.constant 0 : i32
    return %c0_i32, %c0_i32_0 : i32, i32
  }
  func.func @transform_6(%arg0: i32) -> (i32, i32) {
    %c0_i32 = arith.constant 0 : i32
    %c0_i32_0 = arith.constant 0 : i32
    %c0_i32_1 = arith.constant 0 : i32
    return %c0_i32, %c0_i32_0 : i32, i32
  }
  func.func @transform_7(%arg0: i32) -> (i32, i32) {
    %c0_i32 = arith.constant 0 : i32
    %c0_i32_0 = arith.constant 0 : i32
    return %c0_i32, %arg0 : i32, i32
  }
}

</mosaic_0001>

<bundles_post_ra>
// kernel: _qnet_forward.1
= control target key start
LH: loop header
LB: loop body
LE: loop exit
PB: predicated region body
PF: predicated region fallthrough
CT: control target
= control target key end

     0   :  { %vm68_vm0 = vcmask 1043456   ;;  %vm55_vm1 = vcmask 31744   ;;  %v457_v3 = vmov 0   ;;  %vm189_vm2 = vcmask 261120   ;;  %s570_s0 = inlined_call_operand.vmem [shape: f32[4,128], index: 0, kind: input, shape index: {}]   ;;  %s571_s1 = inlined_call_operand.vmem [shape: f32[32,4], index: 1, kind: input, shape index: {}]   ;;  %s572_s2 = inlined_call_operand.vmem [shape: f32[32,1], index: 2, kind: input, shape index: {}]   ;;  %s573_s4 = inlined_call_operand.vmem [shape: f32[32,1], index: 4, kind: input, shape index: {}]   ;;  %s574_s6 = inlined_call_operand.vmem [shape: f32[2,1], index: 6, kind: input, shape index: {}]   ;;  %s575_s3 = inlined_call_operand.vmem [shape: f32[32,32], index: 3, kind: input, shape index: {}]   ;;  %s576_s5 = inlined_call_operand.vmem [shape: f32[2,32], index: 5, kind: input, shape index: {}]   ;;  %s577_s7 = inlined_call_operand.vmem [shape: f32[2,128], index: 7, kind: output, shape index: {}]  }
   0x1   :  { %v26_v0 = vld [vmem:[%s570_s0] sm:$0xf]  ;;  %v28_v2 = vld [vmem:[%s571_s1 + $0x8] sm:$0xff]  ;;  %455 = vset.pattern.permute.xlu0 %v457_v3  ;;  %456 = vset.pattern.permute.xlu1 %v457_v3  ;;  %v29_v4 = vld [vmem:[%s571_s1 + $0x10] sm:$0xff]  ;;  %v458_v37 = vmov 0.0|0.0   ;;  %vm459_vm3 = vmmov 0  }
   0x2   :  { %v27_v1 = vld [vmem:[%s571_s1] sm:$0xff]  ;;  %404 = vmatprep.subr.msk.mxu0 %vm68_vm0, %v26_v0  ;;  %v33_v6 = vld [vmem:[%s572_s2 + $0x10] sm:$0xff]  ;;  %v32_v7 = vld [vmem:[%s572_s2 + $0x8] sm:$0xff]  ;;  %v460_v38 = vmov 0.0  }
   0x3   :  { %406 = vmatprep.mubr.msk.f32.mxu0 %vm55_vm1, %v27_v1  ;;  %v31_v5 = vld [vmem:[%s572_s2] sm:$0xff]  ;;  %405 = vmatpush3.msk.msra.mxu0 %vm68_vm0, %v26_v0  ;;  %v30_v8 = vld [vmem:[%s571_s1 + $0x18] sm:$0xff]  ;;  %v166_v11 = vld [vmem:[%s573_s4 + $0x8] sm:$0xff] }
   0x4   :  { %37 = vperm.xlu0 %455, %v31_v5   ;;  %407 = vmatmul.mubr.msk.f32.vlgmr.msra.gmra.mrb[0].mxu0 %vm55_vm1, %v28_v2  ;;  %v34_v9 = vld [vmem:[%s572_s2 + $0x18] sm:$0xff]  ;;  %v165_v10 = vld [vmem:[%s573_s4] sm:$0xff]  ;;  %v167_v12 = vld [vmem:[%s573_s4 + $0x10] sm:$0xff] }
   0x5   :  { %47 = vperm.xlu1 %456, %v33_v6   ;;  %409 = vmatprep.mubr.msk.f32.mxu0 %vm55_vm1, %v29_v4  ;;  %v168_v13 = vld [vmem:[%s573_s4 + $0x18] sm:$0xff]  ;;  %v292_v14 = vld [vmem:[%s574_s6] sm:$0x3]  ;;  %v162_v34 = vld [vmem:[%s575_s3 + $0x8] sm:$0xff] }
   0x6   :  { %v161_v15 = vld [vmem:[%s575_s3] sm:$0xff]  ;;  %v163_v35 = vld [vmem:[%s575_s3 + $0x10] sm:$0xff]  ;;  %v164_v36 = vld [vmem:[%s575_s3 + $0x18] sm:$0xff]  ;;  %445 = vmatprep.subr.bf16.mxu0 %v458_v37 }
   0x7   :  { %420 = vmatprep.mubr.msk.f32.mxu1 %vm189_vm2, %v161_v15  ;;  %v291_v57 = vld [vmem:[%s576_s5] sm:$0x3] }
   0x8   :  { %42 = vperm.xlu0 %455, %v32_v7   ;;  %410 = vmatmul.mubr.msk.f32.gmra.mrb[2].mxu0 %vm55_vm1, %v30_v8 }
   0x9   :  { %52 = vperm.xlu1 %456, %v34_v9   ;;  %434 = vmatprep.mubr.msk.f32.mxu0 %vm459_vm3, %v460_v38 }
   0xc   :  { %171 = vperm.xlu0 %455, %v165_v10  }
   0xd   :  { %176 = vperm.xlu1 %456, %v166_v11  }
  0x10   :  { %181 = vperm.xlu0 %455, %v167_v12  }
  0x11   :  { %186 = vperm.xlu1 %456, %v168_v13  }
  0x14   :  { %295 = vperm.xlu0 %455, %v292_v14  }
  0x83   :  { %v38_v16 = vpop.permute.xlu0 %37 }
  0x84   :  { %v48_v17 = vpop.permute.xlu1 %47 }
  0x87   :  { %v43_v18 = vpop.permute.xlu0 %42 }
  0x88   :  { %v53_v24 = vpop.permute.xlu1 %52 }
  0x8b   :  { %v172_v40 = vpop.permute.xlu0 %171 }
  0x8c   :  { %v177_v39 = vpop.permute.xlu1 %176 }
  0x8f   :  { %v182_v49 = vpop.permute.xlu0 %181 }
  0x90   :  { %v187_v46 = vpop.permute.xlu1 %186 }
  0x93   :  { %v296_v58 = vpop.permute.xlu0 %295 }
  0xd7   :  { %v408_v19 = vpop.f32.mrb[0].mxu0 }
  0xd8   :  { %v144_v20 = vadd.f32 %v408_v19, %v43_v18  ;;  %v138_v21 = vpop.f32.mrb[1].mxu0 }
  0xd9   :  { %v139_v22 = vadd.f32 %v138_v21, %v38_v16 }
  0xda   :  { %v158_v23 = vmax.f32 %v144_v20, 0.0 }
  0xdb   :  { %v157_v25 = vmax.f32 %v139_v22, 0.0  ;;  %v411_v26 = vpop.f32.mrb[2].mxu0 }
  0xdc   :  { %v154_v27 = vadd.f32 %v411_v26, %v53_v24  ;;  %v148_v28 = vpop.f32.mrb[3].mxu0 }
  0xdd   :  { %v149_v29 = vadd.f32 %v148_v28, %v48_v17  ;;  %v437_v30 = vpack.c.bf16 %v158_v23, %v157_v25 }
  0xde   :  { %v160_v31 = vmax.f32 %v154_v27, 0.0 }
  0xdf   :  { %v159_v32 = vmax.f32 %v149_v29, 0.0  ;;  %438 = vmatprep.subr.bf16.mxu1 %v437_v30 }
  0xe0   :  { %440 = vmatpush3.bf16.msra.mxu1 %v437_v30 }
  0xe1   :  { %v441_v33 = vpack.c.bf16 %v160_v31, %v159_v32 }
  0xe3   :  { %442 = vmatprep.subr.bf16.mxu1 %v441_v33 }
  0xe4   :  { %444 = vmatpush3.bf16.msra.mxu1 %v441_v33 }
  0xe7   :  { %421 = vmatmul.mubr.msk.f32.vlgmr.msra.gmra.mrb[0].mxu1 %vm189_vm2, %v162_v34 }
  0xe8   :  { %423 = vmatprep.mubr.msk.f32.mxu1 %vm189_vm2, %v163_v35 }
  0xeb   :  { %424 = vmatmul.mubr.msk.f32.gmra.mrb[2].mxu1 %vm189_vm2, %v164_v36 }
 0x1ba   :  { %v422_v41 = vpop.f32.mrb[0].mxu1 }
 0x1bb   :  { %v274_v42 = vadd.f32 %v422_v41, %v177_v39  ;;  %v268_v43 = vpop.f32.mrb[1].mxu1 }
 0x1bc   :  { %v269_v44 = vadd.f32 %v268_v43, %v172_v40 }
 0x1bd   :  { %v288_v45 = vmax.f32 %v274_v42, 0.0 }
 0x1be   :  { %v287_v47 = vmax.f32 %v269_v44, 0.0  ;;  %v425_v48 = vpop.f32.mrb[2].mxu1 }
 0x1bf   :  { %v284_v50 = vadd.f32 %v425_v48, %v187_v46  ;;  %v278_v51 = vpop.f32.mrb[3].mxu1 }
 0x1c0   :  { %v446_v52 = vpack.c.bf16 %v288_v45, %v287_v47  ;;  %v279_v53 = vadd.f32 %v278_v51, %v182_v49 }
 0x1c1   :  { %v290_v54 = vmax.f32 %v284_v50, 0.0 }
 0x1c2   :  { %v289_v55 = vmax.f32 %v279_v53, 0.0  ;;  %447 = vmatpush3.bf16.msra.mxu0 %v446_v52 }
 0x1c3   :  { %448 = vmatprep.subr.bf16.mxu0 %v458_v37 }
 0x1c4   :  { %v449_v56 = vpack.c.bf16 %v290_v54, %v289_v55 }
 0x1c6   :  { %450 = vmatpush3.bf16.msra.mxu0 %v449_v56 }
 0x1c9   :  { %435 = vmatmul.mubr.msk.f32.vlgmr.msra.gmra.mrb[4].mxu0 %vm189_vm2, %v291_v57 }
 0x29c   :  { %v367_v59 = vpop.f32.mrb[4].mxu0 }
 0x29d   :  { %v368_v60 = vadd.f32 %v367_v59, %v296_v58  ;;  %v436_v61 = vpop.f32.mrb[5].mxu0 }
 0x29f   :  { %371 = vst [vmem:[%s577_s7] sm:$0x3] %v368_v60 }

</bundles_post_ra>
